<compile_context>
chip_gen: v6e
topology: v6e:2x2x1
jax: 0.10.0
libtpu: 0.0.40
codegen_flags: <defaults>
</compile_context>

<pallas_src>
import jax
import jax.numpy as jnp
from jax.experimental import pallas as pl
from jax.experimental.pallas import tpu as pltpu


def _fused_kernel(x_ref, pool_ref, wp_ref, bp_ref, wn_ref, bn_ref, wc_ref, bc_ref,
                  out_ref):
    # x_ref block: (TB*P, PD) patch rows for a tile of TB batch elements.
    x = x_ref[...]

    # ---- backbone: patch conv as one big matmul + bias + ReLU (MXU) ----
    feat = jnp.dot(x, wp_ref[...], preferred_element_type=jnp.float32)
    feat = jnp.maximum(feat + bp_ref[...], 0.0)                       # (TB*P, D)

    # ---- neck: global average pool via MXU (1/P folded into pool_ref) ----
    pooled = jnp.dot(pool_ref[...], feat.astype(x.dtype),
                     preferred_element_type=jnp.float32)              # (TB, D)
    neck = jnp.dot(pooled.astype(x.dtype), wn_ref[...],
                   preferred_element_type=jnp.float32)
    neck = jnp.maximum(neck + bn_ref[...], 0.0)                       # (TB, D)

    # ---- classifier head + set_pred (softmax) ----
    logits = jnp.dot(neck.astype(x.dtype), wc_ref[...],
                     preferred_element_type=jnp.float32) + bc_ref[...]  # (TB, K)
    m = jnp.max(logits, axis=-1, keepdims=True)
    e = jnp.exp(logits - m)
    probs = e * pl.reciprocal(jnp.sum(e, axis=-1, keepdims=True), approx=True)

    # Merged output: row 0 = logits, row 1 = probs  -> one writeback per step.
    out_ref[:, 0:1, :] = logits[:, None, :]
    out_ref[:, 1:2, :] = probs[:, None, :]


def extract_patches_nchw(x, k):
    """NCHW -> (N, P, C*k*k) patch rows, matching Conv2d(kernel=k, stride=k)."""
    N, C, H, W = x.shape
    x = x.reshape(N, C, H // k, k, W // k, k)
    x = jnp.transpose(x, (0, 2, 4, 1, 3, 5))      # N, H/k, W/k, C, k, k
    return x.reshape(N, (H // k) * (W // k), C * k * k)


def _choose_batch_tile(n, p):
    """Batch tile TB (a divisor of n).

    Prefer large tiles (amortize per-step overhead, fill MXU sublanes); keep
    >=2 'parallel' tiles only when each tile still carries enough rows, so
    v7x's second TensorCore is used without paying launch overhead at toy sizes.
    """
    target_rows = 2048
    tb = max(1, min(n, max(1, target_rows // max(p, 1))))
    while n % tb != 0:
        tb -= 1
    if n // tb < 2 and n % 2 == 0 and (n // 2) * p >= 512:
        tb = n // 2
    # Multi-tile grids need the row block (TB*P) to respect the 8-sublane rule.
    if n // tb > 1 and (tb * p) % 8 != 0:
        tb = n
    return tb


def patch_cls_net_forward(x_nchw, params, *, patch=4, compute_dtype=jnp.float32):
    """val_step semantics: returns (logits, probs), each of shape (N, K).

    Set compute_dtype=jnp.bfloat16 for non-toy sizes on v6e/v7x (full-rate MXU,
    half the input DMA bytes); accumulation stays f32 in-kernel either way.
    """
    wp, bp, wn, bn, wc, bc = params
    x_p = extract_patches_nchw(x_nchw.astype(jnp.float32), patch)  # (N, P, PD)
    N, P, PD = x_p.shape
    D = wp.shape[1]
    K = wc.shape[1]

    TB = _choose_batch_tile(N, P)
    num_tiles = N // TB
    rows = TB * P

    # Flatten batch*patch rows so each grid step feeds one (TB*P, PD) MXU matmul.
    x_rows = x_p.reshape(N * P, PD).astype(compute_dtype)

    # Block-averaging matrix with 1/P folded in: pooled = pool_mat @ feat (MXU).
    pool_mat = jnp.kron(jnp.eye(TB, dtype=jnp.float32),
                        jnp.full((1, P), 1.0 / P, jnp.float32)).astype(compute_dtype)

    wp_c = wp.astype(compute_dtype)
    wn_c = wn.astype(compute_dtype)
    wc_c = wc.astype(compute_dtype)
    bp_f = bp.astype(jnp.float32)
    bn_f = bn.astype(jnp.float32)
    bc_f = bc.astype(jnp.float32)

    grid_spec = pltpu.PrefetchScalarGridSpec(
        num_scalar_prefetch=0,
        grid=(num_tiles,),
        in_specs=[
            pl.BlockSpec((rows, PD), lambda t: (t, 0)),
            # Constant index maps below: Pallas keeps these resident in VMEM
            # across grid steps (no per-step refetch).
            pl.BlockSpec((TB, rows), lambda t: (0, 0)),
            pl.BlockSpec((PD, D), lambda t: (0, 0)),
            pl.BlockSpec((1, D), lambda t: (0, 0)),
            pl.BlockSpec((D, D), lambda t: (0, 0)),
            pl.BlockSpec((1, D), lambda t: (0, 0)),
            pl.BlockSpec((D, K), lambda t: (0, 0)),
            pl.BlockSpec((1, K), lambda t: (0, 0)),
        ],
        out_specs=pl.BlockSpec((TB, 2, K), lambda t: (t, 0, 0)),
    )

    out = pl.pallas_call(
        _fused_kernel,
        grid_spec=grid_spec,
        out_shape=jax.ShapeDtypeStruct((N, 2, K), jnp.float32),
        compiler_params=pltpu.CompilerParams(
            dimension_semantics=("parallel",)),
    )(x_rows, pool_mat, wp_c, bp_f, wn_c, bn_f, wc_c, bc_f)

    return out[:, 0, :], out[:, 1, :]


def init_params(key, c_in=4, patch=4, dim=32, num_classes=6):
    pd = c_in * patch * patch
    ks = jax.random.split(key, 6)
    wp = jax.random.normal(ks[0], (pd, dim), jnp.float32) * 0.05
    bp = jax.random.normal(ks[1], (1, dim), jnp.float32) * 0.01
    wn = jax.random.normal(ks[2], (dim, dim), jnp.float32) * 0.05
    bn = jax.random.normal(ks[3], (1, dim), jnp.float32) * 0.01
    wc = jax.random.normal(ks[4], (dim, num_classes), jnp.float32) * 0.05
    bc = jax.random.normal(ks[5], (1, num_classes), jnp.float32) * 0.01
    return (wp, bp, wn, bn, wc, bc)


def _reference(x_nchw, params, patch=4):
    wp, bp, wn, bn, wc, bc = params
    x_p = extract_patches_nchw(x_nchw.astype(jnp.float32), patch)
    feat = jnp.maximum(jnp.einsum('npd,de->npe', x_p, wp) + bp[0], 0.0)
    pooled = feat.mean(axis=1)
    neck = jnp.maximum(pooled @ wn + bn[0], 0.0)
    logits = neck @ wc + bc[0]
    probs = jax.nn.softmax(logits, axis=-1)
    return logits, probs


if __name__ == "__main__":
    key = jax.random.PRNGKey(0)
    k_x, k_p = jax.random.split(key)

    # databatch['images'] : NCHW
    x = jax.random.normal(k_x, (2, 4, 16, 16), jnp.float32)
    params = init_params(k_p, c_in=4, patch=4, dim=32, num_classes=6)

    logits, probs = patch_cls_net_forward(x, params, patch=4)
    jax.block_until_ready((logits, probs))

    ref_logits, ref_probs = _reference(x, params, patch=4)
    assert jnp.allclose(logits, ref_logits, atol=1e-4, rtol=1e-4)
    # probs use the EUP approx reciprocal -> slightly looser tolerance
    assert jnp.allclose(probs, ref_probs, atol=2e-3, rtol=2e-3)

    print("KERNEL_OK")
</pallas_src>

<mosaic_0001>
module attributes {stable_mosaic.version = 11 : i64} {
  func.func @_fused_kernel(%arg0: i32, %arg1: memref<32x64xf32, #tpu.memory_space<vmem>>, %arg2: memref<2x32xf32, #tpu.memory_space<vmem>>, %arg3: memref<64x32xf32, #tpu.memory_space<vmem>>, %arg4: memref<1x32xf32, #tpu.memory_space<vmem>>, %arg5: memref<32x32xf32, #tpu.memory_space<vmem>>, %arg6: memref<1x32xf32, #tpu.memory_space<vmem>>, %arg7: memref<32x6xf32, #tpu.memory_space<vmem>>, %arg8: memref<1x6xf32, #tpu.memory_space<vmem>>, %arg9: memref<2x2x6xf32, #tpu.memory_space<vmem>>) attributes {dimension_semantics = [#tpu.dimension_semantics<parallel>], iteration_bounds = array<i64: 1>, scalar_prefetch = 0 : i64, scratch_operands = 0 : i64, tpu.core_type = #tpu.core_type<tc>, window_params = [{transform_indices = @transform_0, window_bounds = array<i64: 32, 64>}, {pipeline_mode = #tpu.pipeline_mode<synchronous>, transform_indices = @transform_1, window_bounds = array<i64: 2, 32>}, {pipeline_mode = #tpu.pipeline_mode<synchronous>, transform_indices = @transform_2, window_bounds = array<i64: 64, 32>}, {pipeline_mode = #tpu.pipeline_mode<synchronous>, transform_indices = @transform_3, window_bounds = array<i64: 1, 32>}, {pipeline_mode = #tpu.pipeline_mode<synchronous>, transform_indices = @transform_4, window_bounds = array<i64: 32, 32>}, {pipeline_mode = #tpu.pipeline_mode<synchronous>, transform_indices = @transform_5, window_bounds = array<i64: 1, 32>}, {pipeline_mode = #tpu.pipeline_mode<synchronous>, transform_indices = @transform_6, window_bounds = array<i64: 32, 6>}, {pipeline_mode = #tpu.pipeline_mode<synchronous>, transform_indices = @transform_7, window_bounds = array<i64: 1, 6>}, {transform_indices = @transform_8, window_bounds = array<i64: 2, 2, 6>}]} {
    %c0 = arith.constant 0 : index
    %c0_0 = arith.constant 0 : index
    %0 = vector.load %arg1[%c0, %c0_0] : memref<32x64xf32, #tpu.memory_space<vmem>>, vector<32x64xf32>
    %c0_1 = arith.constant 0 : index
    %c0_2 = arith.constant 0 : index
    %1 = vector.load %arg3[%c0_1, %c0_2] : memref<64x32xf32, #tpu.memory_space<vmem>>, vector<64x32xf32>
    %cst = arith.constant dense<0.000000e+00> : vector<32x32xf32>
    %2 = tpu.matmul %0, %1, %cst {dimension_numbers = #tpu.dot_dimension_numbers<[1], [0], [0], [1], [0, 0, 1, 1], [], []>} : vector<32x64xf32>, vector<64x32xf32>, vector<32x32xf32> -> vector<32x32xf32>
    %c0_3 = arith.constant 0 : index
    %c0_4 = arith.constant 0 : index
    %3 = vector.load %arg4[%c0_3, %c0_4] : memref<1x32xf32, #tpu.memory_space<vmem>>, vector<1x32xf32>
    %4 = vector.broadcast %3 : vector<1x32xf32> to vector<32x32xf32>
    %5 = arith.addf %2, %4 : vector<32x32xf32>
    %cst_5 = arith.constant 0.000000e+00 : f32
    %6 = vector.broadcast %cst_5 : f32 to vector<32x32xf32>
    %7 = arith.maximumf %5, %6 : vector<32x32xf32>
    %c0_6 = arith.constant 0 : index
    %c0_7 = arith.constant 0 : index
    %8 = vector.load %arg2[%c0_6, %c0_7] : memref<2x32xf32, #tpu.memory_space<vmem>>, vector<2x32xf32>
    %cst_8 = arith.constant dense<0.000000e+00> : vector<2x32xf32>
    %9 = tpu.matmul %8, %7, %cst_8 {dimension_numbers = #tpu.dot_dimension_numbers<[1], [0], [0], [1], [0, 0, 1, 1], [], []>} : vector<2x32xf32>, vector<32x32xf32>, vector<2x32xf32> -> vector<2x32xf32>
    %c0_9 = arith.constant 0 : index
    %c0_10 = arith.constant 0 : index
    %10 = vector.load %arg5[%c0_9, %c0_10] : memref<32x32xf32, #tpu.memory_space<vmem>>, vector<32x32xf32>
    %cst_11 = arith.constant dense<0.000000e+00> : vector<2x32xf32>
    %11 = tpu.matmul %9, %10, %cst_11 {dimension_numbers = #tpu.dot_dimension_numbers<[1], [0], [0], [1], [0, 0, 1, 1], [], []>} : vector<2x32xf32>, vector<32x32xf32>, vector<2x32xf32> -> vector<2x32xf32>
    %c0_12 = arith.constant 0 : index
    %c0_13 = arith.constant 0 : index
    %12 = vector.load %arg6[%c0_12, %c0_13] : memref<1x32xf32, #tpu.memory_space<vmem>>, vector<1x32xf32>
    %13 = vector.broadcast %12 : vector<1x32xf32> to vector<2x32xf32>
    %14 = arith.addf %11, %13 : vector<2x32xf32>
    %cst_14 = arith.constant 0.000000e+00 : f32
    %15 = vector.broadcast %cst_14 : f32 to vector<2x32xf32>
    %16 = arith.maximumf %14, %15 : vector<2x32xf32>
    %c0_15 = arith.constant 0 : index
    %c0_16 = arith.constant 0 : index
    %17 = vector.load %arg7[%c0_15, %c0_16] : memref<32x6xf32, #tpu.memory_space<vmem>>, vector<32x6xf32>
    %cst_17 = arith.constant dense<0.000000e+00> : vector<2x6xf32>
    %18 = tpu.matmul %16, %17, %cst_17 {dimension_numbers = #tpu.dot_dimension_numbers<[1], [0], [0], [1], [0, 0, 1, 1], [], []>} : vector<2x32xf32>, vector<32x6xf32>, vector<2x6xf32> -> vector<2x6xf32>
    %c0_18 = arith.constant 0 : index
    %c0_19 = arith.constant 0 : index
    %19 = vector.load %arg8[%c0_18, %c0_19] : memref<1x6xf32, #tpu.memory_space<vmem>>, vector<1x6xf32>
    %20 = vector.broadcast %19 : vector<1x6xf32> to vector<2x6xf32>
    %21 = arith.addf %18, %20 : vector<2x6xf32>
    %cst_20 = arith.constant dense<0xFF800000> : vector<2xf32>
    %22 = vector.multi_reduction <maximumf>, %21, %cst_20 [1] : vector<2x6xf32> to vector<2xf32>
    %23 = vector.shape_cast %22 : vector<2xf32> to vector<2x1xf32>
    %24 = vector.broadcast %23 : vector<2x1xf32> to vector<2x6xf32>
    %25 = arith.subf %21, %24 : vector<2x6xf32>
    %26 = math.exp %25 : vector<2x6xf32>
    %cst_21 = arith.constant dense<0.000000e+00> : vector<2xf32>
    %27 = vector.multi_reduction <add>, %26, %cst_21 [1] : vector<2x6xf32> to vector<2xf32>
    %28 = vector.shape_cast %27 : vector<2xf32> to vector<2x1xf32>
    %29 = tpu.reciprocal %28 {approx = true} : vector<2x1xf32> -> vector<2x1xf32>
    %30 = vector.broadcast %29 : vector<2x1xf32> to vector<2x6xf32>
    %31 = arith.mulf %26, %30 : vector<2x6xf32>
    %32 = vector.shape_cast %21 : vector<2x6xf32> to vector<2x1x6xf32>
    %c0_22 = arith.constant 0 : index
    %c0_23 = arith.constant 0 : index
    %c0_24 = arith.constant 0 : index
    %33 = vector.load %arg9[%c0_22, %c0_23, %c0_24] : memref<2x2x6xf32, #tpu.memory_space<vmem>>, vector<2x1x6xf32>
    tpu.vector_store %arg9[%c0_22, %c0_23, %c0_24], %32 {strides = array<i32>} : memref<2x2x6xf32, #tpu.memory_space<vmem>>, vector<2x1x6xf32>,
    %34 = vector.shape_cast %31 : vector<2x6xf32> to vector<2x1x6xf32>
    %c0_25 = arith.constant 0 : index
    %c1 = arith.constant 1 : index
    %c0_26 = arith.constant 0 : index
    %35 = vector.load %arg9[%c0_25, %c1, %c0_26] : memref<2x2x6xf32, #tpu.memory_space<vmem>>, vector<2x1x6xf32>
    tpu.vector_store %arg9[%c0_25, %c1, %c0_26], %34 {strides = array<i32>} : memref<2x2x6xf32, #tpu.memory_space<vmem>>, vector<2x1x6xf32>,
    return
  }
  func.func @transform_0(%arg0: i32) -> (i32, i32) {
    %c0_i32 = arith.constant 0 : i32
    %c0_i32_0 = arith.constant 0 : i32
    return %arg0, %c0_i32 : i32, i32
  }
  func.func @transform_1(%arg0: i32) -> (i32, i32) {
    %c0_i32 = arith.constant 0 : i32
    %c0_i32_0 = arith.constant 0 : i32
    %c0_i32_1 = arith.constant 0 : i32
    return %c0_i32, %c0_i32_0 : i32, i32
  }
  func.func @transform_2(%arg0: i32) -> (i32, i32) {
    %c0_i32 = arith.constant 0 : i32
    %c0_i32_0 = arith.constant 0 : i32
    %c0_i32_1 = arith.constant 0 : i32
    return %c0_i32, %c0_i32_0 : i32, i32
  }
  func.func @transform_3(%arg0: i32) -> (i32, i32) {
    %c0_i32 = arith.constant 0 : i32
    %c0_i32_0 = arith.constant 0 : i32
    %c0_i32_1 = arith.constant 0 : i32
    return %c0_i32, %c0_i32_0 : i32, i32
  }
  func.func @transform_4(%arg0: i32) -> (i32, i32) {
    %c0_i32 = arith.constant 0 : i32
    %c0_i32_0 = arith.constant 0 : i32
    %c0_i32_1 = arith.constant 0 : i32
    return %c0_i32, %c0_i32_0 : i32, i32
  }
  func.func @transform_5(%arg0: i32) -> (i32, i32) {
    %c0_i32 = arith.constant 0 : i32
    %c0_i32_0 = arith.constant 0 : i32
    %c0_i32_1 = arith.constant 0 : i32
    return %c0_i32, %c0_i32_0 : i32, i32
  }
  func.func @transform_6(%arg0: i32) -> (i32, i32) {
    %c0_i32 = arith.constant 0 : i32
    %c0_i32_0 = arith.constant 0 : i32
    %c0_i32_1 = arith.constant 0 : i32
    return %c0_i32, %c0_i32_0 : i32, i32
  }
  func.func @transform_7(%arg0: i32) -> (i32, i32) {
    %c0_i32 = arith.constant 0 : i32
    %c0_i32_0 = arith.constant 0 : i32
    %c0_i32_1 = arith.constant 0 : i32
    return %c0_i32, %c0_i32_0 : i32, i32
  }
  func.func @transform_8(%arg0: i32) -> (i32, i32, i32) {
    %c0_i32 = arith.constant 0 : i32
    %c0_i32_0 = arith.constant 0 : i32
    %c0_i32_1 = arith.constant 0 : i32
    return %arg0, %c0_i32, %c0_i32_0 : i32, i32, i32
  }
}

</mosaic_0001>

<bundles_post_ra>
// kernel: tpu_custom_call.1
= control target key start
LH: loop header
LB: loop body
LE: loop exit
PB: predicated region body
PF: predicated region fallthrough
CT: control target
= control target key end

     0   :  { %vm49_vm0 = vcmask 523264   ;;  %s744_s0 = inlined_call_operand.vmem [shape: f32[32,64], index: 0, kind: input, shape index: {}]   ;;  %s745_s1 = inlined_call_operand.vmem [shape: f32[2,32], index: 1, kind: input, shape index: {}]   ;;  %s746_s2 = inlined_call_operand.vmem [shape: f32[64,32], index: 2, kind: input, shape index: {}]   ;;  %s747_s3 = inlined_call_operand.vmem [shape: f32[1,32], index: 3, kind: input, shape index: {}]   ;;  %s748_s4 = inlined_call_operand.vmem [shape: f32[32,32], index: 4, kind: input, shape index: {}]   ;;  %s749_s5 = inlined_call_operand.vmem [shape: f32[1,32], index: 5, kind: input, shape index: {}]   ;;  %s750_s6 = inlined_call_operand.vmem [shape: f32[32,6], index: 6, kind: input, shape index: {}]   ;;  %s751_s7 = inlined_call_operand.vmem [shape: f32[1,6], index: 7, kind: input, shape index: {}]   ;;  %s752_s8 = inlined_call_operand.hbm [shape: f32[2,2,6], index: 8, kind: output, shape index: {}]  }
   0x1   :  { %v41_v0 = vld [vmem:[%s746_s2 + $0x38] sm:$0xff]  ;;  %v40_v1 = vld [vmem:[%s746_s2 + $0x30] sm:$0xff]  ;;  %v39_v2 = vld [vmem:[%s746_s2 + $0x28] sm:$0xff] }
   0x2   :  { %515 = vmatprep.subr.mxu0 %v41_v0  ;;  %v30_v3 = vld [vmem:[%s744_s0] sm:$0xff] }
   0x3   :  { %516 = vmatpush3.msra.mxu0 %v41_v0  ;;  %531 = vmatprep.mubr.msk.f32.mxu0 %vm49_vm0, %v30_v3  ;;  %v38_v4 = vld [vmem:[%s746_s2 + $0x20] sm:$0xff] }
   0x4   :  { %517 = vmatprep.subr.mxu0 %v40_v1 }
   0x5   :  { %518 = vmatpush3.msra.mxu0 %v40_v1 }
   0x6   :  { %13 = vsyncpa [#allocation3], 0  ;;  %519 = vmatprep.subr.mxu0 %v39_v2  ;;  %v37_v5 = vld [vmem:[%s746_s2 + $0x18] sm:$0xff]  ;;  %v36_v6 = vld [vmem:[%s746_s2 + $0x10] sm:$0xff]  ;;  %v602_v12 = vmov 0.0   ;;  %vm603_vm1 = vmmov 0   ;;  %v411_v44 = vlaneseq }
   0x7   :  { %520 = vmatpush3.msra.mxu0 %v39_v2  ;;  %v35_v7 = vld [vmem:[%s746_s2 + $0x8] sm:$0xff]  ;;  %v34_v8 = vld [vmem:[%s746_s2] sm:$0xff]  ;;  %v32_v10 = vld [vmem:[%s744_s0 + $0x10] sm:$0xff]  ;;  %537 = vmatprep.subr.mxu1 %v602_v12  ;;  %vm152_vm2 = vcmask 261120   ;;  %v604_v42 = vmov 1966171168  }
   0x8   :  { %521 = vmatprep.subr.mxu0 %v38_v4  ;;  %v31_v9 = vld [vmem:[%s744_s0 + $0x8] sm:$0xff]  ;;  %v33_v11 = vld [vmem:[%s744_s0 + $0x18] sm:$0xff]  ;;  %545 = vmatprep.mubr.msk.f32.mxu1 %vm603_vm1, %v602_v12  ;;  %v478_v15 = vld [vmem:[%s747_s3] ss:$0 sm:$0xff]  ;;  %v409_v43 = vunpack.c.l.s4 %v604_v42  ;;  %v412_v46 = vshrl.u32 %v411_v44, 7  ;;  %vm395_vm3 = vcmask 41984  }
   0x9   :  { %522 = vmatpush3.msra.mxu0 %v38_v4  ;;  %v151_v26 = vld [vmem:[%s745_s1] sm:$0x3]  ;;  %v229_v27 = vld [vmem:[%s748_s4 + $0x18] sm:$0xff]  ;;  %v228_v28 = vld [vmem:[%s748_s4 + $0x10] sm:$0xff]  ;;  %vm432_vm4 = vcmask 40960  }
   0xa   :  { %523 = vmatprep.subr.mxu0 %v37_v5  ;;  %v227_v29 = vld [vmem:[%s748_s4 + $0x8] sm:$0xff]  ;;  %v226_v30 = vld [vmem:[%s748_s4] sm:$0xff]  ;;  %v314_v31 = vld [vmem:[%s750_s6 + $0x18] sm:$0xff]  ;;  %v410_v45 = vunpack.c.0.s8 %v409_v43 }
   0xb   :  { %524 = vmatpush3.msra.mxu0 %v37_v5  ;;  %v313_v32 = vld [vmem:[%s750_s6 + $0x10] sm:$0xff]  ;;  %v312_v35 = vld [vmem:[%s750_s6 + $0x8] sm:$0xff]  ;;  %v311_v36 = vld [vmem:[%s750_s6] sm:$0xff] }
   0xc   :  { %525 = vmatprep.subr.mxu0 %v36_v6  ;;  %v484_v37 = vld [vmem:[%s749_s5] ss:$0 sm:$0xff]  ;;  %v413_v48 = vsub.s32 %v410_v45, %v412_v46  ;;  %s605_s5 = smov [#allocation2]  }
   0xd   :  { %526 = vmatpush3.msra.mxu0 %v36_v6  ;;  %v486_v47 = vld [vmem:[%s751_s7] ss:$0 sm:$0xff]  ;;  %s467_s6 = sshll.u32 %s605_s5, 4  ;;  %s468_s6 = int_to_ptr.vmem [resolvable:$true] %s467_s6 }
   0xe   :  { %527 = vmatprep.subr.mxu0 %v35_v7  ;;  %s580_s7 = scalar_lea.vmem %s468_s6, 64  ;;  %p585_p1 = scmp.lt.s32.totalorder %s468_s6, %s468_s6 }
   0xf   :  { %528 = vmatpush3.msra.mxu0 %v35_v7  ;;  %p581_p0 = scmp.ne.s32.totalorder %s468_s6, %s580_s7  ;;  %p586_p2 = scmp.lt.s32.totalorder %s580_s7, %s580_s7 }
  0x10   :  { %529 = vmatprep.subr.mxu0 %v34_v8 }
  0x11   :  { %530 = vmatpush3.msra.mxu0 %v34_v8  ;;  %p587_p3 = por %p586_p2, %p585_p1 }
  0x12   :  { %532 = vmatmul.mubr.msk.f32.vlgmr.msra.gmra.mxu0 %vm49_vm0, %v31_v9  ;;  %559 = vmatprep.subr.mxu0 %v602_v12 }
  0x13   :  { %534 = vmatprep.mubr.msk.f32.mxu0 %vm49_vm0, %v32_v10  ;;  %560 = vmatpush3.msra.mxu0 %v314_v31  ;;  %p588_p4 = pnand %p587_p3, %p581_p0 }
  0x14   :  { %561 = vmatprep.subr.mxu0 %v602_v12 }
  0x15   :  { %562 = vmatpush3.msra.mxu0 %v313_v32 }
  0x16   :  { %535 = vmatmul.mubr.msk.f32.gmra.mxu0 %vm49_vm0, %v33_v11  ;;  %563 = vmatprep.subr.mxu0 %v602_v12 }
  0x17   :  { %567 = vmatprep.mubr.msk.f32.mxu0 %vm603_vm1, %v602_v12  ;;  %564 = vmatpush3.msra.mxu0 %v312_v35 }
  0x18   :  { %565 = vmatprep.subr.mxu0 %v602_v12 }
  0x19   :  { %566 = vmatpush3.msra.mxu0 %v311_v36 }
  0xd2   :  { %v533_v13 = vpop.f32.mrf.mxu0 }
  0xd3   :  { %v134_v19 = vadd.f32 %v533_v13, %v478_v15 }
  0xd4   :  { %v128_v14 = vpop.f32.mrf.mxu0 }
  0xd5   :  { %v129_v22 = vadd.f32 %v478_v15, %v128_v14  ;;  %v148_v24 = vmax.f32 %v134_v19, 0.0 }
  0xd6   :  { %v536_v16 = vpop.f32.mrf.mxu0 }
  0xd7   :  { %v144_v17 = vadd.f32 %v536_v16, %v478_v15  ;;  %v147_v25 = vmax.f32 %v129_v22, 0.0 }
  0xd8   :  { %v138_v18 = vpop.f32.mrf.mxu0 }
  0xd9   :  { %v150_v20 = vmax.f32 %v144_v17, 0.0  ;;  %v139_v21 = vadd.f32 %v478_v15, %v138_v18 }
  0xdb   :  { %v149_v23 = vmax.f32 %v139_v21, 0.0  ;;  %538 = vmatpush3.msra.mxu1 %v150_v20 }
  0xdc   :  { %539 = vmatprep.subr.mxu1 %v602_v12 }
  0xdd   :  { %540 = vmatpush3.msra.mxu1 %v149_v23 }
  0xde   :  { %541 = vmatprep.subr.mxu1 %v602_v12 }
  0xdf   :  { %542 = vmatpush3.msra.mxu1 %v148_v24 }
  0xe0   :  { %543 = vmatprep.subr.mxu1 %v602_v12 }
  0xe1   :  { %544 = vmatpush3.msra.mxu1 %v147_v25 }
  0xe2   :  { %546 = vmatmul.mubr.msk.f32.vlgmr.msra.gmra.mxu1 %vm152_vm2, %v151_v26  ;;  %548 = vmatprep.subr.mxu1 %v602_v12 }
  0xe3   :  { %549 = vmatpush3.msra.mxu1 %v229_v27  ;;  %556 = vmatprep.mubr.msk.f32.mxu1 %vm603_vm1, %v602_v12 }
  0xe4   :  { %550 = vmatprep.subr.mxu1 %v602_v12 }
  0xe5   :  { %551 = vmatpush3.msra.mxu1 %v228_v28 }
  0xe6   :  { %552 = vmatprep.subr.mxu1 %v602_v12 }
  0xe7   :  { %553 = vmatpush3.msra.mxu1 %v227_v29 }
  0xe8   :  { %554 = vmatprep.subr.mxu1 %v602_v12 }
  0xe9   :  { %555 = vmatpush3.msra.mxu1 %v226_v30 }
 0x1a2   :  { %v222_v33 = vpop.f32.mrf.mxu1 }
 0x1a3   :  { %557 = vmatmul.mubr.msk.f32.vlgmr.msra.gmra.mxu1 %vm152_vm2, %v222_v33 }
 0x1a4   :  { %v547_v34 = vpop.f32.mrf.mxu1 }
 0x263   :  { %v306_v38 = vpop.f32.mrf.mxu1 }
 0x264   :  { %v307_v39 = vadd.f32 %v484_v37, %v306_v38 }
 0x265   :  { %v558_v40 = vpop.f32.mrf.mxu1 }
 0x266   :  { %v310_v41 = vmax.f32 %v307_v39, 0.0 }
 0x268   :  { %568 = vmatmul.mubr.msk.f32.vlgmr.msra.gmra.mxu0 %vm152_vm2, %v310_v41 }
 0x328   :  { %v391_v49 = vpop.f32.mrf.mxu0 }
 0x329   :  { %v392_v50 = vadd.f32 %v486_v47, %v391_v49 }
 0x32a   :  { %v569_v51 = vpop.f32.mrf.mxu0 }
 0x32b   :  { %v414_v52 = vrot.slane %v392_v50, %v413_v48  ;;  %v396_v53 = vsel %vm395_vm3, %v392_v50, -inf }
 0x32c   :  { %397 = vmax.xlane.f32.xlu0 %v396_v53 }
 0x32d   :  { %v415_v54 = vcombine.high %v414_v52, %v414_v52  ;;  %v422_v55 = vrot.slane %v414_v52, %v413_v48 }
 0x32f   :  { %v429_v56 = vrot.slane %v415_v54, %v413_v48  ;;  %433 = vst.msk [vmem:[#allocation2] sm:$0x1] %vm432_vm4, %v422_v55 }
 0x331   :  { %434 = vst.msk [vmem:[#allocation2 + $0x2] sm:$0x1] %vm432_vm4, %v429_v56 }
 0x3b5   :  { %v398_v57 = vpop.xlane.xlu0 %397 }
 0x3b6   :  { %v399_v58 = vsub.f32 %v392_v50, %v398_v57 }
 0x3b8   :  { %v400_v59 = vmul.f32 1.442695, %v399_v58 }
 0x3ba   :  { %576 = vpow2.f32 %v400_v59 }
 0x3c7   :  { %v577_v60 = vpop.eup %576 }
 0x3c8   :  { %v402_v61 = vsel %vm395_vm3, %v577_v60, 0.0 }
 0x3c9   :  { %403 = vadd.xlane.f32.xlu0 %v402_v61 }
 0x452   :  { %v404_v62 = vpop.xlane.xlu0 %403 }
 0x453   :  { %578 = vrcp.f32 %v404_v62 }
 0x460   :  { %v579_v63 = vpop.eup %578 }
 0x461   :  { %v406_v0 = vmul.f32 %v579_v63, %v577_v60 }
 0x463   :  { %v442_v1 = vrot.slane %v406_v0, %v413_v48 }
 0x465   :  { %v443_v2 = vcombine.high %v442_v1, %v442_v1  ;;  %v450_v3 = vrot.slane %v442_v1, %v413_v48 }
 0x467   :  { %v457_v4 = vrot.slane %v443_v2, %v413_v48  ;;  %460 = vst.msk [vmem:[#allocation2 + $0x1] sm:$0x1] %vm432_vm4, %v450_v3 }
 0x469   :  { %461 = vst.msk [vmem:[#allocation2 + $0x3] sm:$0x1] %vm432_vm4, %v457_v4 }
 0x46a   :  { %591 = shalt.err (!%p588_p4)
}
 0x46b   :  { %s606_s26 = smov 32   ;;  %s607_s27 = smov 2  }
 0x46c   :  { %473 = dma.vmem_to_hbm [thread:$0]  %s468_s6, 64, %s752_s8, [#allocation3], %s606_s26, %s606_s26, %s607_s27  }
 0x46d   :  { %600 = dma.done.wait [#allocation3], 64  }
 0x46e   :  { %601 = vsyncadd [#allocation3], 4294967232 }
 0x46f   :  { %477 = vsyncpa [#allocation3], 1 }

</bundles_post_ra>
